<compile_context>
chip_gen: v7x
topology: tpu7x:2x2x1
jax: 0.10.0
libtpu: 0.0.40
codegen_flags: <defaults>
</compile_context>

<pallas_src>
import functools

import jax
import jax.numpy as jnp
from jax import lax
from jax.experimental import pallas as pl
from jax.experimental.pallas import tpu as pltpu

# ----- config consistent with the reference module -----
N_EMBED = 512          # n_embed
H_SIZE = 64            # head size (constructor arg of MaskedScaledDotProduct)
MAX_SEQ_LEN = 256      # bound of the registered tril buffer
NEG_INF = float("-inf")


# ---------------------------------------------------------------------------
# Fused masked-attention kernel (one grid step per batch-block)
# ---------------------------------------------------------------------------
def _masked_attention_kernel(x_ref, wqkv_ref, o_ref, *, h_size):
    # x_ref: (b_blk, T, C) f32 | wqkv_ref: (C, 3H) bf16, H^-0.5 folded into q cols
    # o_ref: (1, b_blk, T*H)
    b_blk, T, C = x_ref.shape

    # Fused QKV projection: one big MXU pass, bf16 operands / f32 accumulation.
    x2d = x_ref[...].reshape(b_blk * T, C).astype(jnp.bfloat16)
    qkv = jnp.dot(x2d, wqkv_ref[...],
                  preferred_element_type=jnp.float32)               # (b_blk*T, 3H)
    qkv = qkv.reshape(b_blk, T, 3 * h_size)
    # NOTE: k/v slices start mid-vreg (lane 64/128); review marked this
    # "verify-before-acting" (usually hidden under MXU work), so left as-is.
    q = qkv[:, :, :h_size]              # already scaled by H^-0.5 (folded into wq)
    k = qkv[:, :, h_size:2 * h_size]
    v = qkv[:, :, 2 * h_size:]

    # score = q @ k^T (scale already applied); bf16 operands / f32 accumulation.
    s = jnp.einsum("bqd,bkd->bqk",
                   q.astype(jnp.bfloat16), k.astype(jnp.bfloat16),
                   preferred_element_type=jnp.float32)              # (b_blk, T, T)

    # Causal mask == tril[:T, :T] of the reference module, built in-kernel.
    row = lax.broadcasted_iota(jnp.int32, (T, T), 0)
    col = lax.broadcasted_iota(jnp.int32, (T, T), 1)
    s = jnp.where((col <= row)[None, :, :], s, NEG_INF)

    # Numerically-stable softmax in f32; reciprocal goes to the EUP slot.
    m = jnp.max(s, axis=-1, keepdims=True)
    p = jnp.exp(s - m)
    denom = jnp.sum(p, axis=-1, keepdims=True)
    p = p * pl.reciprocal(denom, approx=True)
    # TODO(synk): nn.Dropout(0.2) on p is eval-mode identity here.

    out = jnp.einsum("bqk,bkd->bqd",
                     p.astype(jnp.bfloat16), v.astype(jnp.bfloat16),
                     preferred_element_type=jnp.float32)            # (b_blk, T, H)

    # Lane-dense store: (b_blk, T*H) slab, T*H multiple of 128 -> unmasked vst.
    o_ref[0] = out.reshape(b_blk, T * h_size).astype(o_ref.dtype)


# ---------------------------------------------------------------------------
# Weight fusion (hoist out of the per-call hot path and reuse)
# ---------------------------------------------------------------------------
def fuse_qkv_weights(wq, wk, wv):
    """Fold the H^-0.5 scale into wq and fuse Q/K/V into one bf16 (C, 3H) weight.

    Call ONCE (e.g. at parameter-load time) and reuse across forward calls so
    the concat + cast are not re-materialized through HBM every step.
    Weights are stored (in_features, out_features): y = x @ W == PyTorch x @ W_pt.T.
    """
    C, H = wq.shape
    assert wk.shape == (C, H) and wv.shape == (C, H)
    scale = float(H) ** (-0.5)
    return jnp.concatenate([wq * scale, wk, wv], axis=1).astype(jnp.bfloat16)


def _choose_b_blk(B, T, C, itemsize, x_block_budget_bytes=8 << 20):
    """Largest divisor of B that (a) keeps the double-buffered x block within a
    modest VMEM budget and (b) keeps >= 2 grid steps (v7x has 2 TensorCores)."""
    per_batch = 2 * T * C * itemsize          # double-buffered x block, per batch elt
    cap = max(1, x_block_budget_bytes // per_batch)
    target = min(int(cap), max(1, B // 2))    # >= 2 grid steps whenever B >= 2
    b_blk = max(1, target)
    while B % b_blk != 0:                     # avoid ragged / padded blocks
        b_blk -= 1
    return b_blk


def masked_scaled_dot_product(x, w_qkv, *, b_blk=None):
    """Fused Pallas forward of MaskedScaledDotProduct (eval mode).

    x      : (B, T, C) activations (f32; bf16 also works if T % 16 == 0)
    w_qkv  : (C, 3H) fused bf16 weight from fuse_qkv_weights()
    returns: (B, T, H)
    """
    B, T, C = x.shape
    assert w_qkv.shape[0] == C and w_qkv.shape[1] % 3 == 0
    H = w_qkv.shape[1] // 3
    assert T <= MAX_SEQ_LEN
    # Block dims must be (8,128)-divisible or equal to the full array dims.
    assert T % 8 == 0 and C % 128 == 0 and (T * H) % 128 == 0

    if b_blk is None:
        b_blk = _choose_b_blk(B, T, C, x.dtype.itemsize)
    assert B % b_blk == 0
    num_blocks = B // b_blk

    out = pl.pallas_call(
        functools.partial(_masked_attention_kernel, h_size=H),
        grid=(num_blocks,),
        in_specs=[
            pl.BlockSpec((b_blk, T, C), lambda i: (i, 0, 0)),
            # Constant index_map: weight DMA'd into VMEM once, reused every step.
            pl.BlockSpec((C, 3 * H), lambda i: (0, 0)),
        ],
        # Lane-dense output slab: last dim T*H (>=1024 here, multiple of 128).
        out_specs=pl.BlockSpec((1, b_blk, T * H), lambda i: (i, 0, 0)),
        out_shape=jax.ShapeDtypeStruct((num_blocks, b_blk, T * H), x.dtype),
        compiler_params=pltpu.CompilerParams(
            dimension_semantics=("parallel",)),
    )(x, w_qkv)
    return out.reshape(B, T, H)


# ---------------------------------------------------------------------------
# Pure-JAX reference (mirror of the PyTorch forward, eval mode, f32)
# ---------------------------------------------------------------------------
def masked_scaled_dot_product_ref(x, wq, wk, wv):
    q = x @ wq
    k = x @ wk
    v = x @ wv
    s = jnp.einsum("btd,bsd->bts", q, k) * (k.shape[-1] ** (-0.5))
    T = x.shape[1]
    mask = jnp.tril(jnp.ones((T, T), dtype=bool))
    s = jnp.where(mask[None, :, :], s, -jnp.inf)
    p = jax.nn.softmax(s, axis=-1)
    return p @ v


# ---------------------------------------------------------------------------
# Deterministic example
# ---------------------------------------------------------------------------
def _init_linear_weight(key, fan_in, fan_out):
    bound = 1.0 / (fan_in ** 0.5)
    return jax.random.uniform(key, (fan_in, fan_out), jnp.float32, -bound, bound)


if __name__ == "__main__":
    key = jax.random.PRNGKey(0)
    kx, kq, kk, kv = jax.random.split(key, 4)

    B, T, C, H = 2, 16, N_EMBED, H_SIZE
    x = jax.random.normal(kx, (B, T, C), jnp.float32)
    wq = _init_linear_weight(kq, C, H)
    wk = _init_linear_weight(kk, C, H)
    wv = _init_linear_weight(kv, C, H)

    # Hoisted out of the hot path: fuse + scale + bf16 cast once, reuse forever.
    w_qkv = jax.block_until_ready(fuse_qkv_weights(wq, wk, wv))

    out = masked_scaled_dot_product(x, w_qkv)
    out = jax.block_until_ready(out)

    assert out.shape == (B, T, H), out.shape
    assert bool(jnp.all(jnp.isfinite(out)))

    ref = masked_scaled_dot_product_ref(x, wq, wk, wv)
    # bf16 MXU operands (f32 accumulation) -> compare against the f32 reference
    # with a correspondingly relaxed tolerance.
    assert bool(jnp.allclose(out, ref, rtol=2e-2, atol=2e-2)), (
        float(jnp.max(jnp.abs(out - ref))))

    print("KERNEL_OK")
</pallas_src>

<mosaic_0001>
module attributes {stable_mosaic.version = 11 : i64} {
  func.func @_masked_attention_kernel(%arg0: i32, %arg1: memref<1x16x512xf32, #tpu.memory_space<vmem>>, %arg2: memref<512x192xbf16, #tpu.memory_space<vmem>>, %arg3: memref<1x1x1024xf32, #tpu.memory_space<vmem>>) attributes {dimension_semantics = [#tpu.dimension_semantics<parallel>], iteration_bounds = array<i64: 2>, scalar_prefetch = 0 : i64, scratch_operands = 0 : i64, tpu.core_type = #tpu.core_type<tc>, window_params = [{transform_indices = @transform_0, window_bounds = array<i64: 1, 16, 512>}, {pipeline_mode = #tpu.pipeline_mode<synchronous>, transform_indices = @transform_1, window_bounds = array<i64: 512, 192>}, {transform_indices = @transform_2, window_bounds = array<i64: 1, 1, 1024>}]} {
    %c0 = arith.constant 0 : index
    %c0_0 = arith.constant 0 : index
    %c0_1 = arith.constant 0 : index
    %0 = vector.load %arg1[%c0, %c0_0, %c0_1] : memref<1x16x512xf32, #tpu.memory_space<vmem>>, vector<1x16x512xf32>
    %1 = vector.shape_cast %0 : vector<1x16x512xf32> to vector<16x512xf32>
    %2 = arith.truncf %1 : vector<16x512xf32> to vector<16x512xbf16>
    %c0_2 = arith.constant 0 : index
    %c0_3 = arith.constant 0 : index
    %3 = vector.load %arg2[%c0_2, %c0_3] : memref<512x192xbf16, #tpu.memory_space<vmem>>, vector<512x192xbf16>
    %cst = arith.constant dense<0.000000e+00> : vector<16x192xf32>
    %4 = tpu.matmul %2, %3, %cst {dimension_numbers = #tpu.dot_dimension_numbers<[1], [0], [0], [1], [0, 0, 1, 1], [], []>} : vector<16x512xbf16>, vector<512x192xbf16>, vector<16x192xf32> -> vector<16x192xf32>
    %5 = vector.shape_cast %4 : vector<16x192xf32> to vector<1x16x192xf32>
    %6 = vector.extract_strided_slice %5 {offsets = [0, 0, 0], sizes = [1, 16, 64], strides = [1, 1, 1]} : vector<1x16x192xf32> to vector<1x16x64xf32>
    %7 = vector.extract_strided_slice %5 {offsets = [0, 0, 64], sizes = [1, 16, 64], strides = [1, 1, 1]} : vector<1x16x192xf32> to vector<1x16x64xf32>
    %8 = vector.extract_strided_slice %5 {offsets = [0, 0, 128], sizes = [1, 16, 64], strides = [1, 1, 1]} : vector<1x16x192xf32> to vector<1x16x64xf32>
    %9 = arith.truncf %6 : vector<1x16x64xf32> to vector<1x16x64xbf16>
    %10 = arith.truncf %7 : vector<1x16x64xf32> to vector<1x16x64xbf16>
    "tpu.trace_start"() <{level = 10 : i32, message = "bqd,bkd->bqk"}> : () -> ()
    %cst_4 = arith.constant dense<0.000000e+00> : vector<1x16x16xf32>
    %11 = tpu.matmul %9, %10, %cst_4 {dimension_numbers = #tpu.dot_dimension_numbers<[2], [2], [1], [1], [0, 0, 0, 1, 1, 1], [0], [0]>} : vector<1x16x64xbf16>, vector<1x16x64xbf16>, vector<1x16x16xf32> -> vector<1x16x16xf32>
    "tpu.trace_stop"() : () -> ()
    %12 = tpu.iota {dimensions = array<i32: 0>} : vector<16x16xi32>
    %13 = tpu.iota {dimensions = array<i32: 1>} : vector<16x16xi32>
    %14 = arith.cmpi sle, %13, %12 : vector<16x16xi32>
    %15 = vector.shape_cast %14 : vector<16x16xi1> to vector<1x16x16xi1>
    %cst_5 = arith.constant 0xFF800000 : f32
    %16 = vector.broadcast %cst_5 : f32 to vector<1x16x16xf32>
    %17 = arith.select %15, %11, %16 : vector<1x16x16xi1>, vector<1x16x16xf32>
    %cst_6 = arith.constant dense<0xFF800000> : vector<1x16xf32>
    %18 = vector.multi_reduction <maximumf>, %17, %cst_6 [2] : vector<1x16x16xf32> to vector<1x16xf32>
    %19 = vector.shape_cast %18 : vector<1x16xf32> to vector<1x16x1xf32>
    %20 = vector.broadcast %19 : vector<1x16x1xf32> to vector<1x16x16xf32>
    %21 = arith.subf %17, %20 : vector<1x16x16xf32>
    %22 = math.exp %21 : vector<1x16x16xf32>
    %cst_7 = arith.constant dense<0.000000e+00> : vector<1x16xf32>
    %23 = vector.multi_reduction <add>, %22, %cst_7 [2] : vector<1x16x16xf32> to vector<1x16xf32>
    %24 = vector.shape_cast %23 : vector<1x16xf32> to vector<1x16x1xf32>
    %25 = tpu.reciprocal %24 {approx = true} : vector<1x16x1xf32> -> vector<1x16x1xf32>
    %26 = vector.broadcast %25 : vector<1x16x1xf32> to vector<1x16x16xf32>
    %27 = arith.mulf %22, %26 : vector<1x16x16xf32>
    %28 = arith.truncf %27 : vector<1x16x16xf32> to vector<1x16x16xbf16>
    %29 = arith.truncf %8 : vector<1x16x64xf32> to vector<1x16x64xbf16>
    "tpu.trace_start"() <{level = 10 : i32, message = "bqk,bkd->bqd"}> : () -> ()
    %cst_8 = arith.constant dense<0.000000e+00> : vector<1x16x64xf32>
    %30 = tpu.matmul %28, %29, %cst_8 {dimension_numbers = #tpu.dot_dimension_numbers<[2], [1], [1], [2], [0, 0, 0, 1, 1, 2], [0], [0]>} : vector<1x16x16xbf16>, vector<1x16x64xbf16>, vector<1x16x64xf32> -> vector<1x16x64xf32>
    "tpu.trace_stop"() : () -> ()
    %31 = vector.shape_cast %30 : vector<1x16x64xf32> to vector<1x1024xf32>
    %c0_9 = arith.constant 0 : index
    %c0_10 = arith.constant 0 : index
    %c0_11 = arith.constant 0 : index
    %32 = vector.load %arg3[%c0_9, %c0_10, %c0_11] : memref<1x1x1024xf32, #tpu.memory_space<vmem>>, vector<1x1x1024xf32>
    %33 = vector.shape_cast %32 : vector<1x1x1024xf32> to vector<1x1024xf32>
    %34 = vector.shape_cast %31 : vector<1x1024xf32> to vector<1x1x1024xf32>
    tpu.vector_store %arg3[%c0_9, %c0_10, %c0_11], %34 {strides = array<i32>} : memref<1x1x1024xf32, #tpu.memory_space<vmem>>, vector<1x1x1024xf32>,
    return
  }
  func.func @transform_0(%arg0: i32) -> (i32, i32, i32) {
    %c0_i32 = arith.constant 0 : i32
    %c0_i32_0 = arith.constant 0 : i32
    %c0_i32_1 = arith.constant 0 : i32
    return %arg0, %c0_i32, %c0_i32_0 : i32, i32, i32
  }
  func.func @transform_1(%arg0: i32) -> (i32, i32) {
    %c0_i32 = arith.constant 0 : i32
    %c0_i32_0 = arith.constant 0 : i32
    %c0_i32_1 = arith.constant 0 : i32
    return %c0_i32, %c0_i32_0 : i32, i32
  }
  func.func @transform_2(%arg0: i32) -> (i32, i32, i32) {
    %c0_i32 = arith.constant 0 : i32
    %c0_i32_0 = arith.constant 0 : i32
    %c0_i32_1 = arith.constant 0 : i32
    return %arg0, %c0_i32, %c0_i32_0 : i32, i32, i32
  }
}

</mosaic_0001>

<bundles_post_ra>
// kernel: tpu_custom_call.1
= control target key start
LH: loop header
LB: loop body
LE: loop exit
PB: predicated region body
PF: predicated region fallthrough
CT: control target
= control target key end

     0   :  { %7 = vsyncpa [#allocation3], 0  ;;  %s1712_s0 = inlined_call_operand.vmem [shape: f32[2,16,512], index: 0, kind: input, shape index: {}]   ;;  %s1713_s1 = inlined_call_operand.vmem [shape: bf16[512,192], index: 1, kind: input, shape index: {}]   ;;  %s1714_s2 = inlined_call_operand.hbm [shape: f32[2,1,1024], index: 2, kind: output, shape index: {}]  }
   0x1   :  { %9 = vsyncpa [#allocation3 + $0x1], 0  ;;  %s1361_s9 = smov 0   ;;  %s1363_s10 = smov 0  }
   0x2   :  { %s1365_s11 = smov 0   ;;  %s1367_s12 = smov 0  }
   0x3 LB: > { %s1382_s13 = sadd.s32 4294967295, %s1337_s12   ;;  %s1026_s14 = sadd.s32 4294967294, %s1337_s12   ;;  %s1337_s12 = sphi %s1367_s12, %s1720_s12   ;;  %s1333_s11 = sphi %s1365_s11, %s1719_s11   ;;  %s1329_s10 = sphi %s1363_s10, %s1718_s10   ;;  %s1325_s9 = sphi %s1361_s9, %s1717_s9  }
   0x4   : > { %s1386_s15 = sadd.s32 1, %s1337_s12   ;;  %s69_s16 = sadd.s32 1, %s1333_s11 }
   0x5   : > { %s66_s17 = ssub.s32 %s1337_s12, %s1386_s15  ;;  %p79_p0 = scmp.ne.s32.totalorder %s1333_s11, %s1329_s10 }
   0x6   : > { %p67_p1 = scmp.eq.s32.totalorder %s66_s17, 0  ;;  %p80_p2 = scmp.eq.s32.totalorder %s1382_s13, 1 }
   0x7   : > { %p85_p3 = scmp.ne.s32.totalorder %s1329_s10, %s1325_s9  ;;  %p86_p4 = scmp.eq.s32.totalorder %s1026_s14, 1 }
   0x8   : > { %s1397_s18 = scalar_select %p67_p1, %s1333_s11, %s69_s16  }
   0x9   : > { %p1399_p5 = por %p80_p2, %p79_p0  ;;  %p1403_p6 = por %p86_p4, %p85_p3 }
   0xa   : > { %p1029_p7 = scmp.ge.s32.totalorder %s1337_s12, 1  ;;  %p115_p8 = scmp.lt.s32.totalorder %s1337_s12, 3 }
   0xc   : > { %p116_p9 = pnand %p1029_p7, %p115_p8 }
   0xd   : > { %v1171_v0 = vld [vmem:[%s1713_s1 + $0x4] ss:$8 sps:$4 sm:$0xff] (!%p116_p9)   ;;  %v1175_v2 = vld [vmem:[%s1713_s1] ss:$8 sps:$4 sm:$0xff] (!%p116_p9)   ;;  %v1177_v4 = vld [vmem:[%s1713_s1 + $0x14] ss:$8 sps:$4 sm:$0xff] (!%p116_p9)  }
   0xe   : > { %119 = sbr.rel (%p116_p9) target bundleno = 1335 (0x537), region = 28  ;;  %v1173_v1 = vld [vmem:[%s1713_s1 + $0x104] ss:$8 sps:$4 sm:$0xff] (!%p116_p9)   ;;  %539 = vmatprep.subr.bf16.mxu1 (!%p116_p9), %v1171_v0  ;;  %v1176_v3 = vld [vmem:[%s1713_s1 + $0x100] ss:$8 sps:$4 sm:$0xff] (!%p116_p9)   ;;  %p137_p10 = scmp.lt.s32.totalorder (!%p116_p9), %s1382_s13, 1 }
   0xf   : > { %582 = vmatprep.subr.bf16.mxu0 (!%p116_p9), %v1173_v1  ;;  %540 = vmatpush1.bf16.msra.mxu1 (!%p116_p9), %v1175_v2  ;;  %v1179_v5 = vld [vmem:[%s1713_s1 + $0x114] ss:$8 sps:$4 sm:$0xff] (!%p116_p9)   ;;  %v1181_v6 = vld [vmem:[%s1713_s1 + $0x10] ss:$8 sps:$4 sm:$0xff] (!%p116_p9)   ;;  %v1183_v8 = vld [vmem:[%s1713_s1 + $0x24] ss:$8 sps:$4 sm:$0xff] (!%p116_p9)  }
  0x10   : > { %583 = vmatpush1.bf16.msra.mxu0 (!%p116_p9), %v1176_v3  ;;  %541 = vmatprep.subr.bf16.mxu1 (!%p116_p9), %v1177_v4  ;;  %v1182_v7 = vld [vmem:[%s1713_s1 + $0x110] ss:$8 sps:$4 sm:$0xff] (!%p116_p9)   ;;  %v1185_v9 = vld [vmem:[%s1713_s1 + $0x124] ss:$8 sps:$4 sm:$0xff] (!%p116_p9)   ;;  %v1187_v10 = vld [vmem:[%s1713_s1 + $0x20] ss:$8 sps:$4 sm:$0xff] (!%p116_p9)  }
  0x11   : > { %584 = vmatprep.subr.bf16.mxu0 (!%p116_p9), %v1179_v5  ;;  %v1188_v11 = vld [vmem:[%s1713_s1 + $0x120] ss:$8 sps:$4 sm:$0xff] (!%p116_p9)   ;;  %v1189_v12 = vld [vmem:[%s1713_s1 + $0x34] ss:$8 sps:$4 sm:$0xff] (!%p116_p9)   ;;  %v1193_v14 = vld [vmem:[%s1713_s1 + $0x30] ss:$8 sps:$4 sm:$0xff] (!%p116_p9)  }
  0x12   : > { %v1191_v13 = vld [vmem:[%s1713_s1 + $0x134] ss:$8 sps:$4 sm:$0xff] (!%p116_p9)   ;;  %v1194_v15 = vld [vmem:[%s1713_s1 + $0x130] ss:$8 sps:$4 sm:$0xff] (!%p116_p9)   ;;  %v1195_v16 = vld [vmem:[%s1713_s1 + $0x44] ss:$8 sps:$4 sm:$0xff] (!%p116_p9)  }
  0x13   : > { %542 = vmatpush1.bf16.msra.mxu1 (!%p116_p9), %v1181_v6  ;;  %v1197_v17 = vld [vmem:[%s1713_s1 + $0x144] ss:$8 sps:$4 sm:$0xff] (!%p116_p9)   ;;  %v1199_v18 = vld [vmem:[%s1713_s1 + $0x40] ss:$8 sps:$4 sm:$0xff] (!%p116_p9)   ;;  %v1201_v20 = vld [vmem:[%s1713_s1 + $0x54] ss:$8 sps:$4 sm:$0xff] (!%p116_p9)  }
  0x14   : > { %585 = vmatpush1.bf16.msra.mxu0 (!%p116_p9), %v1182_v7  ;;  %543 = vmatprep.subr.bf16.mxu1 (!%p116_p9), %v1183_v8  ;;  %v1200_v19 = vld [vmem:[%s1713_s1 + $0x140] ss:$8 sps:$4 sm:$0xff] (!%p116_p9)   ;;  %v1203_v21 = vld [vmem:[%s1713_s1 + $0x154] ss:$8 sps:$4 sm:$0xff] (!%p116_p9)   ;;  %v1205_v22 = vld [vmem:[%s1713_s1 + $0x50] ss:$8 sps:$4 sm:$0xff] (!%p116_p9)  }
  0x15   : > { %586 = vmatprep.subr.bf16.mxu0 %v1185_v9  ;;  %v1206_v23 = vld [vmem:[%s1713_s1 + $0x150] ss:$8 sps:$4 sm:$0xff]   ;;  %v1207_v24 = vld [vmem:[%s1713_s1 + $0x64] ss:$8 sps:$4 sm:$0xff]   ;;  %v1211_v26 = vld [vmem:[%s1713_s1 + $0x60] ss:$8 sps:$4 sm:$0xff]  }
  0x16   : > { %v1209_v25 = vld [vmem:[%s1713_s1 + $0x164] ss:$8 sps:$4 sm:$0xff]   ;;  %v1212_v27 = vld [vmem:[%s1713_s1 + $0x160] ss:$8 sps:$4 sm:$0xff]   ;;  %v1213_v28 = vld [vmem:[%s1713_s1 + $0x74] ss:$8 sps:$4 sm:$0xff]  }
  0x17   : > { %544 = vmatpush1.bf16.msra.mxu1 %v1187_v10  ;;  %v1215_v29 = vld [vmem:[%s1713_s1 + $0x174] ss:$8 sps:$4 sm:$0xff]   ;;  %v1217_v30 = vld [vmem:[%s1713_s1 + $0x70] ss:$8 sps:$4 sm:$0xff]   ;;  %v1219_v32 = vld [vmem:[%s1713_s1 + $0x84] ss:$8 sps:$4 sm:$0xff]  }
  0x18   : > { %587 = vmatpush1.bf16.msra.mxu0 %v1188_v11  ;;  %545 = vmatprep.subr.bf16.mxu1 %v1189_v12  ;;  %v1218_v31 = vld [vmem:[%s1713_s1 + $0x170] ss:$8 sps:$4 sm:$0xff]   ;;  %v1221_v33 = vld [vmem:[%s1713_s1 + $0x184] ss:$8 sps:$4 sm:$0xff]   ;;  %v1223_v34 = vld [vmem:[%s1713_s1 + $0x80] ss:$8 sps:$4 sm:$0xff]  }
  0x19   : > { %588 = vmatprep.subr.bf16.mxu0 %v1191_v13  ;;  %v1224_v35 = vld [vmem:[%s1713_s1 + $0x180] ss:$8 sps:$4 sm:$0xff]   ;;  %v1225_v36 = vld [vmem:[%s1713_s1 + $0x94] ss:$8 sps:$4 sm:$0xff]   ;;  %s138_s16 = scalar_select %p137_p10, %s1382_s13, 1  ;;  %v1339_v12 = vmov 0.0  }
  0x1a   : > { %v1227_v37 = vld [vmem:[%s1713_s1 + $0x194] ss:$8 sps:$4 sm:$0xff]   ;;  %v1229_v38 = vld [vmem:[%s1713_s1 + $0x90] ss:$8 sps:$4 sm:$0xff]   ;;  %v1231_v40 = vld [vmem:[%s1713_s1 + $0xa4] ss:$8 sps:$4 sm:$0xff]  }
  0x1b   : > { %546 = vmatpush1.bf16.msra.mxu1 %v1193_v14  ;;  %v1230_v39 = vld [vmem:[%s1713_s1 + $0x190] ss:$8 sps:$4 sm:$0xff]   ;;  %s1104_s28 = sshll.u32 %s138_s16, 6  ;;  %v1233_v41 = vld [vmem:[%s1713_s1 + $0x1a4] ss:$8 sps:$4 sm:$0xff]   ;;  %vm1340_vm0 = vmmov 0  }
  0x1c   : > { %589 = vmatpush1.bf16.msra.mxu0 %v1194_v15  ;;  %547 = vmatprep.subr.bf16.mxu1 %v1195_v16  ;;  %v1235_v42 = vld [vmem:[%s1713_s1 + $0xa0] ss:$8 sps:$4 sm:$0xff]   ;;  %s1546_s14 = scalar_lea.vmem %s1712_s0, %s1104_s28  ;;  %v1237_v44 = vld [vmem:[%s1713_s1 + $0xb4] ss:$8 sps:$4 sm:$0xff]   ;;  %v1241_v50 = vld [vmem:[%s1713_s1 + $0xb0] ss:$8 sps:$4 sm:$0xff]  }
  0x1d   : > { %590 = vmatprep.subr.bf16.mxu0 %v1197_v17  ;;  %v1236_v43 = vld [vmem:[%s1713_s1 + $0x1a0] ss:$8 sps:$4 sm:$0xff]   ;;  %v1239_v45 = vld [vmem:[%s1713_s1 + $0x1b4] ss:$8 sps:$4 sm:$0xff]   ;;  %v1242_v51 = vld [vmem:[%s1713_s1 + $0x1b0] ss:$8 sps:$4 sm:$0xff]  }
  0x1e   : > { %v144_v46 = vld [vmem:[%s1546_s14 + $0x8] sm:$0xff]  ;;  %v146_v48 = vld [vmem:[%s1546_s14 + $0x18] sm:$0xff]  ;;  %v143_v6 = vld [vmem:[%s1546_s14] sm:$0xff]  ;;  %vm629_vm1 = vcmask 523264   ;;  %vm686_vm3 = vcmask 130048   ;;  %s134_s23 = sand.u32 1, %s1329_s10  }
  0x1f   : > { %548 = vmatpush1.bf16.msra.mxu1 %v1199_v18  ;;  %v148_v47 = vld [vmem:[%s1546_s14 + $0x28] sm:$0xff]  ;;  %v150_v49 = vld [vmem:[%s1546_s14 + $0x38] sm:$0xff]  ;;  %v147_v7 = vld [vmem:[%s1546_s14 + $0x20] sm:$0xff]  ;;  %s1030_s24 = sshll.u32 %s134_s23, 3  ;;  %s1105_s25 = sshll.u32 %s1382_s13, 7 }
  0x20   : > { %591 = vmatpush1.bf16.msra.mxu0 %v1200_v19  ;;  %549 = vmatprep.subr.bf16.mxu1 %v1201_v20  ;;  %v152_v52 = vpack.c.bf16 %v148_v47, %v144_v46  ;;  %v154_v53 = vpack.c.bf16 %v150_v49, %v146_v48  ;;  %v1243_v54 = vld [vmem:[%s1713_s1 + $0xc4] ss:$8 sps:$4 sm:$0xff]   ;;  %v1247_v56 = vld [vmem:[%s1713_s1 + $0xc0] ss:$8 sps:$4 sm:$0xff]   ;;  %v1249_v58 = vld [vmem:[%s1713_s1 + $0xd4] ss:$8 sps:$4 sm:$0xff]   ;;  %v151_v10 = vpack.c.bf16 %v147_v7, %v143_v6  ;;  %s1670_s30 = scalar_lea.hbm %s1714_s2, %s1105_s25 }
  0x21   : > { %592 = vmatprep.subr.bf16.mxu0 %v1203_v21  ;;  %v1245_v55 = vld [vmem:[%s1713_s1 + $0x1c4] ss:$8 sps:$4 sm:$0xff]   ;;  %v1248_v57 = vld [vmem:[%s1713_s1 + $0x1c0] ss:$8 sps:$4 sm:$0xff]   ;;  %v1251_v59 = vld [vmem:[%s1713_s1 + $0x1d4] ss:$8 sps:$4 sm:$0xff]  }
  0x22   : > { %571 = vmatprep.mubr.bf16.mxu1 %v152_v52  ;;  %614 = vmatprep.mubr.bf16.mxu0 %v154_v53  ;;  %v1253_v60 = vld [vmem:[%s1713_s1 + $0xd0] ss:$8 sps:$4 sm:$0xff]   ;;  %v1255_v62 = vld [vmem:[%s1713_s1 + $0xe4] ss:$8 sps:$4 sm:$0xff]   ;;  %v1259_v0 = vld [vmem:[%s1713_s1 + $0xe0] ss:$8 sps:$4 sm:$0xff]  }
  0x23   : > { %550 = vmatpush1.bf16.msra.mxu1 %v1205_v22  ;;  %v1254_v61 = vld [vmem:[%s1713_s1 + $0x1d0] ss:$8 sps:$4 sm:$0xff]   ;;  %v1257_v63 = vld [vmem:[%s1713_s1 + $0x1e4] ss:$8 sps:$4 sm:$0xff]   ;;  %v1260_v1 = vld [vmem:[%s1713_s1 + $0x1e0] ss:$8 sps:$4 sm:$0xff]  }
  0x24   : > { %593 = vmatpush1.bf16.msra.mxu0 %v1206_v23  ;;  %551 = vmatprep.subr.bf16.mxu1 %v1207_v24  ;;  %v1261_v2 = vld [vmem:[%s1713_s1 + $0xf4] ss:$8 sps:$4 sm:$0xff]   ;;  %v1265_v4 = vld [vmem:[%s1713_s1 + $0xf0] ss:$8 sps:$4 sm:$0xff]   ;;  %s136_s26 = scalar_lea.vmem [#allocation2], %s1030_s24  ;;  %s953_s3 = scalar_lea.sflag [#allocation3], %s134_s23 }
  0x25   : > { %594 = vmatprep.subr.bf16.mxu0 %v1209_v25  ;;  %v1263_v3 = vld [vmem:[%s1713_s1 + $0x1f4] ss:$8 sps:$4 sm:$0xff]   ;;  %v1266_v5 = vld [vmem:[%s1713_s1 + $0x1f0] ss:$8 sps:$4 sm:$0xff]   ;;  %s967_s27 = sshll.u32 %s136_s26, 4  ;;  %s1345_s13 = smov [#allocation2]   ;;  %s1672_s27 = int_to_ptr.vmem [resolvable:$true] %s967_s27 }
  0x26   : > { %v145_v8 = vld [vmem:[%s1546_s14 + $0x10] sm:$0xff]  ;;  %s1275_s4 = scalar_lea.vmem %s1672_s27, 128  ;;  %s1279_s5 = sshll.u32 %s1345_s13, 4  ;;  %s1280_s5 = int_to_ptr.vmem [resolvable:$false] %s1279_s5 }
  0x27   : > { %552 = vmatpush1.bf16.msra.mxu1 %v1211_v26  ;;  %v149_v9 = vld [vmem:[%s1546_s14 + $0x30] sm:$0xff]  ;;  %s1341_s14 = smov 64   ;;  %p1276_p11 = scmp.ne.s32.totalorder %s1672_s27, %s1275_s4 }
  0x28   : > { %595 = vmatpush1.bf16.msra.mxu0 %v1212_v27  ;;  %553 = vmatprep.subr.bf16.mxu1 %v1213_v28  ;;  %v153_v11 = vpack.c.bf16 %v149_v9, %v145_v8  ;;  %s1281_s6 = scalar_lea.vmem %s1280_s5, 256  ;;  %p1282_p0 = scmp.lt.s32.totalorder %s1672_s27, %s1280_s5 }
  0x29   : > { %596 = vmatprep.subr.bf16.mxu0 %v1215_v29  ;;  %v677_v29 = vlaneseq  ;;  %p1277_p12 = pnand %p1276_p11, %p1399_p5  ;;  %p1283_p1 = scmp.lt.s32.totalorder %s1281_s6, %s1275_s4 }
  0x2b   : > { %554 = vmatpush1.bf16.msra.mxu1 %v1217_v30  ;;  %v1623_v30 = vshrl.u32 %v677_v29, 7  ;;  %p1278_p13 = pneg %p1277_p12  ;;  %p1284_p2 = por %p1283_p1, %p1282_p0 }
  0x2c   : > { %597 = vmatpush1.bf16.msra.mxu0 %v1218_v31  ;;  %555 = vmatprep.subr.bf16.mxu1 %v1219_v32  ;;  %v681_v31 = vand.u32 127, %v677_v29 }
  0x2d   : > { %598 = vmatprep.subr.bf16.mxu0 %v1221_v33  ;;  %v679_v32 = vadd.s32 8, %v1623_v30  ;;  %p1285_p3 = pnand %p1284_p2, %p1278_p13 }
  0x2e   : > { %vm682_vm2 = vcmp.le.s32.totalorder %v681_v31, %v1623_v30 }
  0x2f   : > { %556 = vmatpush1.bf16.msra.mxu1 %v1223_v34  ;;  %vm683_vm4 = vcmp.le.s32.totalorder %v681_v31, %v679_v32 }
  0x30   : > { %599 = vmatpush1.bf16.msra.mxu0 %v1224_v35  ;;  %557 = vmatprep.subr.bf16.mxu1 %v1225_v36 }
  0x31   : > { %600 = vmatprep.subr.bf16.mxu0 %v1227_v37 }
  0x33   : > { %558 = vmatpush1.bf16.msra.mxu1 %v1229_v38 }
  0x34   : > { %601 = vmatpush1.bf16.msra.mxu0 %v1230_v39  ;;  %559 = vmatprep.subr.bf16.mxu1 %v1231_v40 }
  0x35   : > { %602 = vmatprep.subr.bf16.mxu0 %v1233_v41 }
  0x37   : > { %560 = vmatpush1.bf16.msra.mxu1 %v1235_v42 }
  0x38   : > { %603 = vmatpush1.bf16.msra.mxu0 %v1236_v43  ;;  %561 = vmatprep.subr.bf16.mxu1 %v1237_v44 }
  0x39   : > { %604 = vmatprep.subr.bf16.mxu0 %v1239_v45 }
  0x3b   : > { %562 = vmatpush1.bf16.msra.mxu1 %v1241_v50 }
  0x3c   : > { %605 = vmatpush1.bf16.msra.mxu0 %v1242_v51  ;;  %563 = vmatprep.subr.bf16.mxu1 %v1243_v54 }
  0x3d   : > { %606 = vmatprep.subr.bf16.mxu0 %v1245_v55 }
  0x3f   : > { %564 = vmatpush1.bf16.msra.mxu1 %v1247_v56 }
  0x40   : > { %607 = vmatpush1.bf16.msra.mxu0 %v1248_v57  ;;  %565 = vmatprep.subr.bf16.mxu1 %v1249_v58  ;;  %v1342_v58 = vmov 1983009808  }
  0x41   : > { %608 = vmatprep.subr.bf16.mxu0 %v1251_v59  ;;  %v757_v59 = vunpack.c.l.s4 %v1342_v58 }
  0x43   : > { %566 = vmatpush1.bf16.msra.mxu1 %v1253_v60  ;;  %v1343_v60 = vmov 1934713408  }
  0x44   : > { %609 = vmatpush1.bf16.msra.mxu0 %v1254_v61  ;;  %567 = vmatprep.subr.bf16.mxu1 %v1255_v62  ;;  %v772_v61 = vunpack.c.l.s4 %v1343_v60  ;;  %v758_v62 = vunpack.c.0.s8 %v757_v59 }
  0x45   : > { %610 = vmatprep.subr.bf16.mxu0 %v1257_v63 }
  0x46   : > { %v773_v63 = vunpack.c.0.s8 %v772_v61 }
  0x47   : > { %568 = vmatpush1.bf16.msra.mxu1 %v1259_v0  ;;  %v761_v0 = vsub.s32 %v758_v62, %v1623_v30 }
  0x48   : > { %611 = vmatpush1.bf16.msra.mxu0 %v1260_v1  ;;  %569 = vmatprep.subr.bf16.mxu1 %v1261_v2  ;;  %v776_v1 = vsub.s32 %v773_v63, %v1623_v30 }
  0x49   : > { %612 = vmatprep.subr.bf16.mxu0 %v1263_v3 }
  0x4b   : > { %570 = vmatpush1.bf16.msra.mxu1 %v1265_v4 }
  0x4c   : > { %613 = vmatpush1.bf16.msra.mxu0 %v1266_v5  ;;  %1116 = vmatprep.subr.bf16.mxu1 %v1339_v12 }
  0x4d   : > { %1110 = vmatprep.subr.bf16.mxu0 %v1339_v12 }
  0x4e   : > { %572 = vmatmul.mubr.bf16.vlgmr.msra.gmra.mrb[0].mxu1 %v151_v10 }
  0x4f   : > { %615 = vmatmul.mubr.bf16.vlgmr.msra.gmra.mrb[0].mxu0 %v153_v11  ;;  %1118 = vmatprep.mubr.msk.bf16.mxu1 %vm1340_vm0, %v1339_v12 }
  0x50   : > { %1112 = vmatprep.mubr.msk.bf16.mxu0 %vm1340_vm0, %v1339_v12 }
 0x121   : > { %v573_v13 = vpop.f32.mrb[0].mxu1 }
 0x122   : > { %v616_v14 = vpop.f32.mrb[0].mxu0  ;;  %v575_v16 = vpop.f32.mrb[1].mxu1 }
 0x123   : > { %v617_v15 = vadd.f32 %v616_v14, %v573_v13  ;;  %v618_v17 = vpop.f32.mrb[1].mxu0  ;;  %v577_v19 = vpop.f32.mrb[2].mxu1 }
 0x124   : > { %v619_v18 = vadd.f32 %v618_v17, %v575_v16  ;;  %v620_v20 = vpop.f32.mrb[2].mxu0  ;;  %v579_v22 = vpop.f32.mrb[3].mxu1 }
 0x125   : > { %v621_v21 = vadd.f32 %v620_v20, %v577_v19  ;;  %v622_v23 = vpop.f32.mrb[3].mxu0 }
 0x126   : > { %v623_v24 = vadd.f32 %v622_v23, %v579_v22 }
 0x127   : > { %v625_v25 = vpack.c.bf16 %v621_v21, %v617_v15 }
 0x128   : > { %v710_v26 = vpack.c.bf16 %v623_v24, %v619_v18 }
 0x129   : > { %627 = vrot.lane.b32.xlu0 %v625_v25, %s1341_s14 }
 0x12a   : > { %1117 = vmatpush3.bf16.msra.mxu1 %v710_v26 }
 0x19b   : > { %v628_v27 = vpop.permute.xlu0 %627 }
 0x19c   : > { %v634_v28 = vsel %vm629_vm1, %v628_v27, 0 }
 0x19d   : > { %1111 = vmatpush3.bf16.xpose.msra.mxu0 %v634_v28 }
 0x1a4   : > { %1113 = vmatmul.mubr.msk.bf16.vlgmr.msra.gmra.mrb[4].mxu0 %vm629_vm1, %v625_v25 }
 0x277   : > { %v670_v33 = vpop.f32.mrb[4].mxu0 }
 0x278   : > { %v684_v34 = vsel %vm682_vm2, %v670_v33, -inf  ;;  %v1114_v35 = vpop.f32.mrb[5].mxu0 }
 0x279   : > { %v673_v36 = vpop.f32.mrb[6].mxu0  ;;  %v687_v37 = vsel %vm686_vm3, %v684_v34, -inf }
 0x27a   : > { %v685_v38 = vsel %vm683_vm4, %v673_v36, -inf  ;;  %688 = vmax.xlane.f32.xlu0 %v687_v37  ;;  %v1115_v39 = vpop.f32.mrb[7].mxu0 }
 0x27b   : > { %v690_v40 = vsel %vm686_vm3, %v685_v38, -inf }
 0x27c   : > { %691 = vmax.xlane.f32.xlu1 %v690_v40 }
 0x307   : > { %v689_v41 = vpop.xlane.xlu0 %688 }
 0x308   : > { %v693_v42 = vsub.f32 %v684_v34, %v689_v41 }
 0x309   : > { %v692_v43 = vpop.xlane.xlu1 %691 }
 0x30a   : > { %v695_v44 = vmul.f32 1.442695, %v693_v42  ;;  %v694_v45 = vsub.f32 %v685_v38, %v692_v43  ;;  %v1344_v38 = vmov 1966171168  }
 0x30b   : > { %v906_v39 = vunpack.c.l.s4 %v1344_v38 }
 0x30c   : > { %1267 = vpow2.f32 %v695_v44  ;;  %v697_v46 = vmul.f32 1.442695, %v694_v45 }
 0x30d   : > { %v907_v43 = vunpack.c.0.s8 %v906_v39 }
 0x30e   : > { %1269 = vpow2.f32 %v697_v46 }
 0x316   : > { %v1268_v47 = vpop.eup %1267 }
 0x317   : > { %v699_v48 = vsel %vm686_vm3, %v1268_v47, 0.0 }
 0x318   : > { %v1270_v49 = vpop.eup %1269  ;;  %700 = vadd.xlane.f32.xlu1 %v699_v48 }
 0x319   : > { %v702_v50 = vsel %vm686_vm3, %v1270_v49, 0.0 }
 0x31c   : > { %703 = vadd.xlane.f32.xlu1 %v702_v50 }
 0x3a5   : > { %v701_v51 = vpop.xlane.xlu1 %700 }
 0x3a6   : > { %1271 = vrcp.f32 %v701_v51 }
 0x3a9   : > { %v704_v52 = vpop.xlane.xlu1 %703 }
 0x3aa   : > { %1273 = vrcp.f32 %v704_v52 }
 0x3b0   : > { %v1272_v53 = vpop.eup %1271 }
 0x3b1   : > { %v707_v55 = vmul.f32 %v1272_v53, %v1268_v47 }
 0x3b4   : > { %v1274_v54 = vpop.eup %1273 }
 0x3b5   : > { %v708_v56 = vmul.f32 %v1274_v54, %v1270_v49  ;;  %v910_v49 = vsub.s32 %v907_v43, %v1623_v30 }
 0x3b7   : > { %v709_v57 = vpack.c.bf16 %v708_v56, %v707_v55 }
 0x3b9   : > { %1119 = vmatmul.mubr.msk.bf16.vlgmr.msra.gmra.mrb[4].mxu1 %vm686_vm3, %v709_v57 }
 0x48c   : > { %v748_v2 = vpop.f32.mrb[4].mxu1 }
 0x48d   : > { %v755_v3 = vcombine.high %v748_v2, %v1339_v12  ;;  %v762_v4 = vrot.slane %v748_v2, %v761_v0  ;;  %v1120_v5 = vpop.f32.mrb[5].mxu1 }
 0x48e   : > { %v751_v6 = vpop.f32.mrb[6].mxu1 }
 0x48f   : > { %v769_v7 = vrot.slane %v755_v3, %v761_v0  ;;  %v770_v8 = vcombine.high %v762_v4, %v1339_v12  ;;  %v777_v9 = vrot.slane %v762_v4, %v776_v1  ;;  %v1121_v10 = vpop.f32.mrb[7].mxu1  ;;  %v811_v18 = vrot.slane %v751_v6, %v761_v0 }
 0x490   : > { %v804_v20 = vcombine.high %v751_v6, %v1339_v12 }
 0x491   : > { %v785_v11 = vcombine.high %v769_v7, %v1339_v12  ;;  %v784_v13 = vrot.slane %v770_v8, %v776_v1  ;;  %v800_v14 = vcombine.high %v777_v9, %v1339_v12  ;;  %v792_v17 = vrot.slane %v769_v7, %v776_v1 }
 0x492   : > { %v819_v21 = vcombine.high %v811_v18, %v1339_v12  ;;  %v826_v22 = vrot.slane %v811_v18, %v776_v1  ;;  %v818_v24 = vrot.slane %v804_v20, %v761_v0 }
 0x493   : > { %v799_v15 = vrot.slane %v785_v11, %v776_v1  ;;  %854 = vrot.lane.b32.xlu1 %v800_v14, %s1341_s14  ;;  %v801_v19 = vcombine.high %v784_v13, %v1339_v12  ;;  %v802_v23 = vcombine.high %v792_v17, %v1339_v12 }
 0x494   : > { %v833_v25 = vrot.slane %v819_v21, %v776_v1  ;;  %v849_v26 = vcombine.high %v826_v22, %v1339_v12  ;;  %v834_v27 = vcombine.high %v818_v24, %v1339_v12  ;;  %v841_v28 = vrot.slane %v818_v24, %v776_v1 }
 0x495   : > { %v803_v16 = vcombine.high %v799_v15, %v1339_v12 }
 0x496   : > { %v850_v29 = vcombine.high %v833_v25, %v1339_v12  ;;  %v851_v31 = vcombine.high %v841_v28, %v1339_v12  ;;  %v848_v32 = vrot.slane %v834_v27, %v776_v1 }
 0x497   : > { %866 = vrot.lane.b32.xlu0 %v803_v16, %s1341_s14  ;;  %858 = vrot.lane.b32.xlu1 %v801_v19, %s1341_s14 }
 0x498   : > { %v852_v33 = vcombine.high %v848_v32, %v1339_v12 }
 0x49b   : > { %862 = vrot.lane.b32.xlu1 %v802_v23, %s1341_s14 }
 0x49f   : > { %870 = vrot.lane.b32.xlu1 %v849_v26, %s1341_s14 }
 0x4a3   : > { %874 = vrot.lane.b32.xlu1 %v850_v29, %s1341_s14 }
 0x4a7   : > { %878 = vrot.lane.b32.xlu1 %v851_v31, %s1341_s14 }
 0x4ab   : > { %882 = vrot.lane.b32.xlu1 %v852_v33, %s1341_s14 }
 0x505   : > { %v855_v34 = vpop.permute.xlu1 %854 }
 0x506   : > { %v885_v47 = vsel %vm629_vm1, %v777_v9, %v855_v34 }
 0x509   : > { %v859_v35 = vpop.permute.xlu1 %858  ;;  %v867_v40 = vpop.permute.xlu0 %866 }
 0x50a   : > { %v886_v44 = vsel %vm629_vm1, %v784_v13, %v859_v35  ;;  %v888_v45 = vsel %vm629_vm1, %v799_v15, %v867_v40 }
 0x50b   : > { %v901_v50 = vcombine.low %v885_v47, %v886_v44 }
 0x50d   : > { %v863_v36 = vpop.permute.xlu1 %862  ;;  %v911_v57 = vrot.slane %v901_v50, %v910_v49 }
 0x50e   : > { %v887_v42 = vsel %vm629_vm1, %v792_v17, %v863_v36 }
 0x50f   : > { %v902_v46 = vcombine.low %v887_v42, %v888_v45 }
 0x511   : > { %v871_v37 = vpop.permute.xlu1 %870  ;;  %v918_v52 = vrot.slane %v902_v46, %v910_v49 }
 0x512   : > { %v889_v51 = vsel %vm629_vm1, %v826_v22, %v871_v37 }
 0x513   : > { %v933_v59 = vcombine.low %v911_v57, %v918_v52 }
 0x515   : > { %v875_v41 = vpop.permute.xlu1 %874  ;;  %v941_v62 = vrot.slane %v933_v59, %v910_v49 }
 0x516   : > { %v890_v48 = vsel %vm629_vm1, %v833_v25, %v875_v41 }
 0x517   : > { %v903_v53 = vcombine.low %v889_v51, %v890_v48 }
 0x519   : > { %v879_v12 = vpop.permute.xlu1 %878  ;;  %v925_v60 = vrot.slane %v903_v53, %v910_v49 }
 0x51a   : > { %v891_v55 = vsel %vm629_vm1, %v841_v28, %v879_v12 }
 0x51d   : > { %v883_v54 = vpop.permute.xlu1 %882 }
 0x51e   : > { %v892_v56 = vsel %vm629_vm1, %v848_v32, %v883_v54 }
 0x51f   : > { %v904_v58 = vcombine.low %v891_v55, %v892_v56 }
 0x521   : > { %v932_v61 = vrot.slane %v904_v58, %v910_v49 }
 0x523   : > { %v934_v30 = vcombine.low %v925_v60, %v932_v61 }
 0x525   : > { %v948_v63 = vrot.slane %v934_v30, %v910_v49 }
 0x527   : > { %v949_v0 = vcombine.low %v941_v62, %v948_v63 }
 0x529   : > { %951 = vst [vmem:[%s136_s26] sm:$0xff] %v949_v0 }
 0x52a   : > { %1288 = shalt.err (!%p1285_p3)
}
 0x52b   : > { %s1289_s7 = scalar_lea.hbm %s1670_s30, 128  ;;  %s1293_s17 = scalar_lea.hbm %s1714_s2, 256 }
 0x52c   : > { %p1290_p4 = scmp.ne.s32.totalorder %s1670_s30, %s1289_s7  ;;  %p1294_p9 = scmp.lt.u32.totalorder %s1670_s30, %s1714_s2 }
 0x52d   : > { %p1295_p10 = scmp.lt.u32.totalorder %s1293_s17, %s1289_s7  ;;  %p1297_p12 = scmp.lt.u32.totalorder %s1289_s7, %s1670_s30 }
 0x52e   : > { %p1291_p7 = pnand %p1290_p4, %p1399_p5 }
 0x52f   : > { %p1296_p11 = por %p1295_p10, %p1294_p9 }
 0x530   : > { %p1292_p8 = pneg %p1291_p7 }
 0x531   : > { %p1298_p13 = por %p1297_p12, %p1296_p11 }
 0x533   : > { %p1299_p0 = pnand %p1298_p13, %p1292_p8 }
 0x535   : > { %1302 = shalt.err (!%p1299_p0)
}
 0x536   : > { %1126 = dma.vmem_to_hbm [thread:$0]  (%p1399_p5), %s1672_s27, 128, %s1670_s30, %s953_s3  }
 0x537 PF: > { %p1132_p1 = scmp.ge.s32.totalorder %s1337_s12, 2  ;;  %s979_s14 = sand.u32 1, %s1325_s9  }
 0x538   : > { %s980_s23 = scalar_lea.sflag [#allocation3], %s979_s14 }
 0x539   : > { %p1129_p2 = pnand %p1132_p1, %p1403_p6 }
 0x53b   : > { %1320 = dma.done.wait (!%p1129_p2), %s980_s23, 128  }
 0x53c   : > { %1322 = vsyncadd (!%p1129_p2), %s980_s23, 4294967168  ;;  %p12_p3 = scmp.ge.s32.totalorder %s1386_s15, 4   ;;  %s1717_s9 = smov %s1329_s10 }
 0x53d   : > { %s1718_s10 = smov %s1333_s11  ;;  %s1719_s11 = smov %s1397_s18 }
 0x53e   : > { %s1720_s12 = smov %s1386_s15  ;;  %14 = sbr.rel (!%p12_p3) target bundleno = 3 (0x3), region = 63 }
 0x545   :  { %985 = vsyncpa [#allocation3], 1 }
 0x546   :  { %987 = vsyncpa [#allocation3 + $0x1], 1 }

</bundles_post_ra>
